<compile_context>
chip_gen: v5e
topology: v5e:2x2
jax: 0.10.0
libtpu: 0.0.40
codegen_flags: <defaults>
</compile_context>

<pallas_src>
import functools

import jax
import jax.numpy as jnp
import numpy as np
from jax.experimental import pallas as pl
from jax.experimental.pallas import tpu as pltpu


# --------------------------------------------------------------------------- #
# Kernels
# --------------------------------------------------------------------------- #
def _fused_matmul_kernel(x_ref, t_ref, o_ref):
    """y = x @ T : one MXU matmul, batch rows folded into M."""
    o_ref[...] = jnp.dot(
        x_ref[...], t_ref[...], preferred_element_type=jnp.float32
    ).astype(o_ref.dtype)


def _factored_matmul_kernel(x_ref, a_ref, b_ref, o_ref):
    """y = (x @ A) @ B : rank-2*l*ck factorization, both stages on the MXU."""
    s = jnp.dot(x_ref[...], a_ref[...], preferred_element_type=jnp.float32)
    o_ref[...] = jnp.dot(
        s.astype(b_ref.dtype), b_ref[...], preferred_element_type=jnp.float32
    ).astype(o_ref.dtype)


# --------------------------------------------------------------------------- #
# Small helpers
# --------------------------------------------------------------------------- #
def _round_up(x, m):
    return (x + m - 1) // m * m


def _tpu_vmem_capacity():
    try:
        return int(pltpu.get_tpu_info().vmem_capacity_bytes)
    except Exception:
        return 64 << 20  # conservative (v7x per-TensorCore)


def _vmem_limit_bytes(need_bytes):
    """Explicit scoped-VMEM request: what we need + margin, capped at 75% of
    physical VMEM (generation-aware) so compiler scratch always has headroom."""
    cap = _tpu_vmem_capacity()
    ceiling = (cap * 3) // 4
    return int(min(max(need_bytes + (4 << 20), 32 << 20), ceiling))


_SINGLE_BUFFER_OK = None


def _probe_kernel(x_ref, o_ref):
    o_ref[...] = x_ref[...]


def _single_buffer_supported():
    """One-time probe: can we single-buffer a grid-invariant operand via
    pipeline_mode=pl.Buffered(1)?  (Robust against older jax versions.)"""
    global _SINGLE_BUFFER_OK
    if _SINGLE_BUFFER_OK is None:
        try:
            spec = pl.BlockSpec((8, 128), lambda i: (0, 0),
                                pipeline_mode=pl.Buffered(1))
            out = pl.pallas_call(
                _probe_kernel,
                out_shape=jax.ShapeDtypeStruct((8, 128), jnp.float32),
                grid=(1,),
                in_specs=[spec],
                out_specs=pl.BlockSpec((8, 128), lambda i: (0, 0)),
            )(jnp.zeros((8, 128), jnp.float32))
            jax.block_until_ready(out)
            _SINGLE_BUFFER_OK = True
        except Exception:
            _SINGLE_BUFFER_OK = False
    return _SINGLE_BUFFER_OK


def _const_spec(block_shape, index_map):
    """BlockSpec for a grid-invariant operand: DMA'd once, single-buffered."""
    if _single_buffer_supported():
        return pl.BlockSpec(block_shape, index_map,
                            pipeline_mode=pl.Buffered(1))
    return pl.BlockSpec(block_shape, index_map)


def _pick_tm(batch):
    """Row-tile for the batch axis: multiple of 8, and >=2 parallel grid steps
    when the batch is big enough (v7x has two TensorCores per chip)."""
    b8 = _round_up(max(batch, 1), 8)
    if b8 <= 128:
        return b8
    if b8 <= 1024:
        return _round_up(pl.cdiv(b8, 2), 8)
    return 512


# --------------------------------------------------------------------------- #
# Host-side precompute (hoisted off the hot path; cache per parameter update)
# --------------------------------------------------------------------------- #
def _dft_matrices(n, l):
    """Real matrices so that rfft / irfft (l retained modes) become matmuls."""
    fwd = np.fft.rfft(np.eye(n), axis=-1)[:, :l]            # (N, l) complex
    fm = n // 2 + 1
    eye_f = np.eye(fm, dtype=np.complex128)[:l]              # (l, Fm)
    inv_r = np.fft.irfft(eye_f, n=n, axis=-1)                 # (l, N)
    inv_i = np.fft.irfft(1j * eye_f, n=n, axis=-1)            # (l, N)
    return np.real(fwd), np.imag(fwd), inv_r, inv_i


def _build_factored_numpy(w_real, w_imag, n, modes1):
    """A (N*ck, 2*l*ck) = rfft ∘ per-mode complex mix; B (2*l*ck, N*ck) = irfft.
    Channel permutation folded in, so x.reshape(B, N*ck) is directly usable."""
    ck = int(np.asarray(w_real).shape[0])
    l = min(modes1, n // 2 + 1)
    d = n * ck
    r = 2 * l * ck

    fr, fi, irr, iri = _dft_matrices(n, l)
    wr = np.asarray(w_real)[:, :, :l].astype(np.float64)
    wi = np.asarray(w_imag)[:, :, :l].astype(np.float64)

    # A[(n,i),(o,p,m)] : (Xr*Wr - Xi*Wi) and (Xr*Wi + Xi*Wr) composed with rfft.
    a_r = np.einsum('nm,iom->niom', fr, wr) - np.einsum('nm,iom->niom', fi, wi)
    a_i = np.einsum('nm,iom->niom', fr, wi) + np.einsum('nm,iom->niom', fi, wr)
    a = np.stack([a_r, a_i], axis=3).reshape(d, r)            # rows (n,i), cols (o,p,m)

    # B[(o,p,m),(n',o')] : truncated irfft, block-diagonal over output channels.
    eye = np.eye(ck)
    b_r = np.einsum('mq,ot->omqt', irr, eye)                   # (ck, l, N, ck)
    b_i = np.einsum('mq,ot->omqt', iri, eye)
    b = np.stack([b_r, b_i], axis=1).reshape(r, d)             # rows (o,p,m), cols (n',o')
    return a, b, d, r


def build_factored_operators(w_real, w_imag, n, modes1, *,
                             compute_dtype=jnp.float32, lane_multiple=128):
    """Spectral (low-rank) path operands, lane-padded to `lane_multiple`."""
    a, b, d, r = _build_factored_numpy(w_real, w_imag, n, modes1)
    rp = _round_up(r, lane_multiple)
    dp = _round_up(d, lane_multiple)
    a_pad = np.zeros((d, rp), np.float64)
    a_pad[:, :r] = a
    b_pad = np.zeros((rp, dp), np.float64)
    b_pad[:r, :d] = b
    return (jnp.asarray(a_pad, dtype=compute_dtype),
            jnp.asarray(b_pad, dtype=compute_dtype))


def build_fused_operator(w_real, w_imag, n, modes1, *,
                         compute_dtype=jnp.float32, lane_multiple=128):
    """Precompose rfft ∘ mix ∘ irfft into T (N*ck, pad(N*ck)); composed in f64."""
    a, b, d, _ = _build_factored_numpy(w_real, w_imag, n, modes1)
    t = a @ b                                                   # (d, d)
    dp = _round_up(d, lane_multiple)
    t_pad = np.zeros((d, dp), np.float64)
    t_pad[:, :d] = t
    return jnp.asarray(t_pad, dtype=compute_dtype)


# --------------------------------------------------------------------------- #
# Pallas-call wrappers
# --------------------------------------------------------------------------- #
def ft1d_fused_apply(x, t_op):
    """x: (B, N, c, k); t_op: (N*ck, Dp).  Single batch-folded MXU matmul."""
    b_, n, c, k = x.shape
    ck = c * k
    d = n * ck
    dp = t_op.shape[1]
    assert t_op.shape[0] == d

    x_flat = x.reshape(b_, d).astype(t_op.dtype)      # free view, no transpose
    tm = _pick_tm(b_)
    bp = _round_up(b_, tm)
    if bp != b_:
        x_flat = jnp.pad(x_flat, ((0, bp - b_), (0, 0)))
    grid = (bp // tm,)

    isz = jnp.dtype(t_op.dtype).itemsize
    const_bufs = 1 if _single_buffer_supported() else 2
    need = (2 * tm * d * isz                # x, double-buffered
            + const_bufs * d * dp * isz     # T
            + 2 * tm * dp * 4)              # out (f32), double-buffered

    y = pl.pallas_call(
        _fused_matmul_kernel,
        out_shape=jax.ShapeDtypeStruct((bp, dp), jnp.float32),
        grid=grid,
        in_specs=[
            pl.BlockSpec((tm, d), lambda i: (i, 0)),
            _const_spec((d, dp), lambda i: (0, 0)),
        ],
        out_specs=pl.BlockSpec((tm, dp), lambda i: (i, 0)),
        compiler_params=pltpu.CompilerParams(
            dimension_semantics=("parallel",),
            vmem_limit_bytes=_vmem_limit_bytes(need),
        ),
    )(x_flat, t_op)
    return y[:b_, :d].reshape(b_, n, c, k)


def ft1d_spectral_apply(x, a_op, b_op):
    """x: (B, N, c, k).  Low-rank factored path: y = (x @ A) @ B."""
    b_, n, c, k = x.shape
    ck = c * k
    d = n * ck
    rp = a_op.shape[1]
    dp = b_op.shape[1]
    assert a_op.shape[0] == d and b_op.shape[0] == rp

    x_flat = x.reshape(b_, d).astype(a_op.dtype)      # free view, no transpose
    tm = _pick_tm(b_)
    bp = _round_up(b_, tm)
    if bp != b_:
        x_flat = jnp.pad(x_flat, ((0, bp - b_), (0, 0)))
    grid = (bp // tm,)

    isz = jnp.dtype(a_op.dtype).itemsize
    const_bufs = 1 if _single_buffer_supported() else 2
    need = (2 * tm * d * isz
            + const_bufs * (d * rp + rp * dp) * isz   # A, B
            + tm * rp * 4                              # intermediate s (f32)
            + 2 * tm * dp * 4)                         # out (f32)

    y = pl.pallas_call(
        _factored_matmul_kernel,
        out_shape=jax.ShapeDtypeStruct((bp, dp), jnp.float32),
        grid=grid,
        in_specs=[
            pl.BlockSpec((tm, d), lambda i: (i, 0)),
            _const_spec((d, rp), lambda i: (0, 0)),
            _const_spec((rp, dp), lambda i: (0, 0)),
        ],
        out_specs=pl.BlockSpec((tm, dp), lambda i: (i, 0)),
        compiler_params=pltpu.CompilerParams(
            dimension_semantics=("parallel",),
            vmem_limit_bytes=_vmem_limit_bytes(need),
        ),
    )(x_flat, a_op, b_op)
    return y[:b_, :d].reshape(b_, n, c, k)


def sparse_kernel_ft1d(x, w_real, w_imag, modes1, *, method="auto",
                       compute_dtype=jnp.float32, lane_multiple=128):
    """Forward pass of sparseKernelFT1d.  x: (B, N, c, k), weights: (ck, ck, modes1).

    NOTE: in production cache the build_* results per parameter update instead
    of rebuilding on every forward call (they are parameter-time constants)."""
    _, n, c, k = x.shape
    ck = c * k
    assert w_real.shape[0] == ck and w_imag.shape == w_real.shape

    d = n * ck
    l = min(modes1, n // 2 + 1)
    r = 2 * l * ck
    dp = _round_up(d, lane_multiple)
    rp = _round_up(r, lane_multiple)
    isz = jnp.dtype(compute_dtype).itemsize

    if method == "auto":
        # Compute- and VMEM-aware: fused does ~N/(4l)x the MACs (and bytes) of
        # the factored path; only take it when it is both cheaper and fits.
        t_bytes = d * dp * isz
        ab_bytes = (d * rp + rp * dp) * isz
        cap = _tpu_vmem_capacity()
        method = "fused" if (t_bytes <= ab_bytes and t_bytes <= cap // 4) \
            else "spectral"

    if method == "fused":
        t_op = build_fused_operator(w_real, w_imag, n, modes1,
                                    compute_dtype=compute_dtype,
                                    lane_multiple=lane_multiple)
        return ft1d_fused_apply(x, t_op)
    if method == "spectral":
        a_op, b_op = build_factored_operators(w_real, w_imag, n, modes1,
                                              compute_dtype=compute_dtype,
                                              lane_multiple=lane_multiple)
        return ft1d_spectral_apply(x, a_op, b_op)
    raise ValueError(f"unknown method: {method}")


# --------------------------------------------------------------------------- #
# Pure-JAX reference (mirrors the PyTorch forward exactly)
# --------------------------------------------------------------------------- #
def _reference(x, w_real, w_imag, modes1):
    b_, n, c, k = x.shape
    ck = c * k
    fm = n // 2 + 1
    l = min(modes1, fm)
    xc = jnp.transpose(x.reshape(b_, n, ck), (0, 2, 1))
    x_fft = jnp.fft.rfft(xc, axis=-1)
    w = (w_real + 1j * w_imag).astype(jnp.complex64)
    out_ft = jnp.zeros((b_, ck, fm), jnp.complex64)
    out_ft = out_ft.at[:, :, :l].set(
        jnp.einsum('bix,iox->box', x_fft[:, :, :l], w[:, :, :l]))
    y = jnp.fft.irfft(out_ft, n=n, axis=-1)
    return jnp.transpose(y, (0, 2, 1)).reshape(b_, n, c, k)


if __name__ == "__main__":
    # Module config: k=4 channels per wavelet, c=1, alpha (modes1) = 8.
    k_dim, c_dim, alpha = 4, 1, 8
    B, N = 2, 16
    ck = c_dim * k_dim
    scale = 1.0 / (c_dim * k_dim * c_dim * k_dim)

    key = jax.random.PRNGKey(0)
    kx, kwr, kwi = jax.random.split(key, 3)
    x = jax.random.normal(kx, (B, N, c_dim, k_dim), dtype=jnp.float32)
    # torch.rand(..., dtype=cfloat): real & imag parts uniform in [0, 1), scaled.
    w_real = scale * jax.random.uniform(kwr, (ck, ck, alpha), dtype=jnp.float32)
    w_imag = scale * jax.random.uniform(kwi, (ck, ck, alpha), dtype=jnp.float32)

    y_ref = _reference(x, w_real, w_imag, alpha)

    # 1) fused single-matmul path (auto picks this for the small config), f32
    y_fused = jax.block_until_ready(
        sparse_kernel_ft1d(x, w_real, w_imag, alpha, method="fused"))
    assert y_fused.shape == (B, N, c_dim, k_dim)
    assert jnp.allclose(y_fused, y_ref, atol=1e-4, rtol=1e-4), "fused path mismatch"

    # 2) factored spectral path (used when T would not fit / N >> 4l), f32
    y_spec = jax.block_until_ready(
        sparse_kernel_ft1d(x, w_real, w_imag, alpha, method="spectral"))
    assert jnp.allclose(y_spec, y_ref, atol=1e-4, rtol=1e-4), "spectral path mismatch"

    # 3) bf16 operands / f32 accumulation (MXU fast path on v5e/v6e/v7x alike),
    #    loosened tolerance; error grows with N*ck since T rows are long dots.
    y_bf16 = jax.block_until_ready(
        sparse_kernel_ft1d(x, w_real, w_imag, alpha, method="fused",
                           compute_dtype=jnp.bfloat16))
    assert jnp.allclose(y_bf16, y_ref, atol=5e-2, rtol=5e-2), "bf16 path mismatch"

    # 4) auto dispatch smoke test
    y_auto = jax.block_until_ready(
        sparse_kernel_ft1d(x, w_real, w_imag, alpha, method="auto"))
    assert jnp.allclose(y_auto, y_ref, atol=1e-4, rtol=1e-4), "auto path mismatch"

    print("KERNEL_OK")
</pallas_src>

<mosaic_0001>
module attributes {stable_mosaic.version = 11 : i64} {
  func.func @_probe_kernel(%arg0: i32, %arg1: memref<8x128xf32, #tpu.memory_space<vmem>>, %arg2: memref<8x128xf32, #tpu.memory_space<vmem>>) attributes {dimension_semantics = [#tpu.dimension_semantics<arbitrary>], iteration_bounds = array<i64: 1>, scalar_prefetch = 0 : i64, scratch_operands = 0 : i64, tpu.core_type = #tpu.core_type<tc>, window_params = [{pipeline_mode = #tpu.pipeline_mode<synchronous>, transform_indices = @transform_0, window_bounds = array<i64: 8, 128>}, {pipeline_mode = #tpu.pipeline_mode<synchronous>, transform_indices = @transform_1, window_bounds = array<i64: 8, 128>}]} {
    %c0 = arith.constant 0 : index
    %c0_0 = arith.constant 0 : index
    %0 = vector.load %arg1[%c0, %c0_0] : memref<8x128xf32, #tpu.memory_space<vmem>>, vector<8x128xf32>
    %c0_1 = arith.constant 0 : index
    %c0_2 = arith.constant 0 : index
    %1 = vector.load %arg2[%c0_1, %c0_2] : memref<8x128xf32, #tpu.memory_space<vmem>>, vector<8x128xf32>
    tpu.vector_store %arg2[%c0_1, %c0_2], %0 {strides = array<i32>} : memref<8x128xf32, #tpu.memory_space<vmem>>, vector<8x128xf32>,
    return
  }
  func.func @transform_0(%arg0: i32) -> (i32, i32) {
    %c0_i32 = arith.constant 0 : i32
    %c0_i32_0 = arith.constant 0 : i32
    %c0_i32_1 = arith.constant 0 : i32
    return %c0_i32, %c0_i32_0 : i32, i32
  }
  func.func @transform_1(%arg0: i32) -> (i32, i32) {
    %c0_i32 = arith.constant 0 : i32
    %c0_i32_0 = arith.constant 0 : i32
    %c0_i32_1 = arith.constant 0 : i32
    return %c0_i32, %c0_i32_0 : i32, i32
  }
}

module attributes {stable_mosaic.version = 11 : i64} {
  func.func @_fused_matmul_kernel(%arg0: i32, %arg1: memref<8x64xf32, #tpu.memory_space<vmem>>, %arg2: memref<64x128xf32, #tpu.memory_space<vmem>>, %arg3: memref<8x128xf32, #tpu.memory_space<vmem>>) attributes {dimension_semantics = [#tpu.dimension_semantics<parallel>], iteration_bounds = array<i64: 1>, scalar_prefetch = 0 : i64, scratch_operands = 0 : i64, tpu.core_type = #tpu.core_type<tc>, window_params = [{transform_indices = @transform_0, window_bounds = array<i64: 8, 64>}, {pipeline_mode = #tpu.pipeline_mode<synchronous>, transform_indices = @transform_1, window_bounds = array<i64: 64, 128>}, {transform_indices = @transform_2, window_bounds = array<i64: 8, 128>}]} {
    %c0 = arith.constant 0 : index
    %c0_0 = arith.constant 0 : index
    %0 = vector.load %arg1[%c0, %c0_0] : memref<8x64xf32, #tpu.memory_space<vmem>>, vector<8x64xf32>
    %c0_1 = arith.constant 0 : index
    %c0_2 = arith.constant 0 : index
    %1 = vector.load %arg2[%c0_1, %c0_2] : memref<64x128xf32, #tpu.memory_space<vmem>>, vector<64x128xf32>
    %cst = arith.constant dense<0.000000e+00> : vector<8x128xf32>
    %2 = tpu.matmul %0, %1, %cst {dimension_numbers = #tpu.dot_dimension_numbers<[1], [0], [0], [1], [0, 0, 1, 1], [], []>} : vector<8x64xf32>, vector<64x128xf32>, vector<8x128xf32> -> vector<8x128xf32>
    %c0_3 = arith.constant 0 : index
    %c0_4 = arith.constant 0 : index
    %3 = vector.load %arg3[%c0_3, %c0_4] : memref<8x128xf32, #tpu.memory_space<vmem>>, vector<8x128xf32>
    tpu.vector_store %arg3[%c0_3, %c0_4], %2 {strides = array<i32>} : memref<8x128xf32, #tpu.memory_space<vmem>>, vector<8x128xf32>,
    return
  }
  func.func @transform_0(%arg0: i32) -> (i32, i32) {
    %c0_i32 = arith.constant 0 : i32
    %c0_i32_0 = arith.constant 0 : i32
    return %arg0, %c0_i32 : i32, i32
  }
  func.func @transform_1(%arg0: i32) -> (i32, i32) {
    %c0_i32 = arith.constant 0 : i32
    %c0_i32_0 = arith.constant 0 : i32
    %c0_i32_1 = arith.constant 0 : i32
    return %c0_i32, %c0_i32_0 : i32, i32
  }
  func.func @transform_2(%arg0: i32) -> (i32, i32) {
    %c0_i32 = arith.constant 0 : i32
    %c0_i32_0 = arith.constant 0 : i32
    return %arg0, %c0_i32 : i32, i32
  }
}

</mosaic_0001>

<bundles_post_ra>
// kernel: tpu_custom_call.1
= control target key start
LH: loop header
LB: loop body
LE: loop exit
PB: predicated region body
PF: predicated region fallthrough
CT: control target
= control target key end

     0   :  { %6 = vsyncpa [#allocation3], 0  ;;  %s114_s0 = inlined_call_operand.hbm [shape: f32[8,128], index: 0, kind: input, shape index: {}]   ;;  %s115_s1 = inlined_call_operand.hbm [shape: f32[8,128], index: 1, kind: output, shape index: {}]  }
   0x1   :  { %7 = vsyncpa [#allocation4], 0  ;;  %s13_s8 = sshll.u32 %s114_s0, 4  ;;  %s96_s9 = smov [#allocation2]   ;;  %s14_s8 = int_to_ptr.hbm [resolvable:$true] %s13_s8 }
   0x2   :  { %s15_s10 = sshll.u32 %s96_s9, 4  ;;  %s16_s10 = int_to_ptr.vmem [resolvable:$true] %s15_s10 }
   0x3   :  { %18 = dma.hbm_to_vmem [thread:$0]  %s14_s8, 128, %s16_s10, [#allocation3]  }
   0x4   :  { %92 = dma.done.wait [#allocation3], 128  }
   0x5   :  { %93 = vsyncadd [#allocation3], 4294967168  ;;  %s97_s11 = smov [#allocation5]   ;;  %s32_s15 = sshll.u32 %s115_s1, 4  ;;  %v23_v0 = vld [vmem:[#allocation2] sm:$0xff]  ;;  %s33_s15 = int_to_ptr.hbm [resolvable:$true] %s32_s15 }
   0x6   :  { %s30_s12 = sshll.u32 %s97_s11, 4  ;;  %24 = vst [vmem:[#allocation5] sm:$0xff] %v23_v0  ;;  %s31_s12 = int_to_ptr.vmem [resolvable:$true] %s30_s12 }
   0x7   :  { %35 = dma.vmem_to_hbm [thread:$0]  %s31_s12, 128, %s33_s15, [#allocation4]  }
   0x8   :  { %94 = dma.done.wait [#allocation4], 128  }
   0x9   :  { %95 = vsyncadd [#allocation4], 4294967168 }
   0xa   :  { %40 = vsyncpa [#allocation3], 1 }
   0xb   :  { %41 = vsyncpa [#allocation4], 1 }

// kernel: tpu_custom_call.1
= control target key start
LH: loop header
LB: loop body
LE: loop exit
PB: predicated region body
PF: predicated region fallthrough
CT: control target
= control target key end

     0   :  { %7 = vsyncpa [#allocation3], 0  ;;  %s207_s0 = inlined_call_operand.hbm [shape: f32[8,64], index: 0, kind: input, shape index: {}]   ;;  %s208_s1 = inlined_call_operand.hbm [shape: f32[64,128], index: 1, kind: input, shape index: {}]   ;;  %s209_s2 = inlined_call_operand.hbm [shape: f32[8,128], index: 2, kind: output, shape index: {}]  }
   0x1   :  { %8 = vsyncpa [#allocation6], 0 }
   0x2   :  { %9 = vsyncpa [#allocation4], 0  ;;  %s15_s11 = sshll.u32 %s207_s0, 4  ;;  %s178_s12 = smov [#allocation2]   ;;  %s16_s11 = int_to_ptr.hbm [resolvable:$true] %s15_s11 }
   0x3   :  { %s17_s13 = sshll.u32 %s178_s12, 4  ;;  %s25_s16 = sshll.u32 %s208_s1, 4  ;;  %s18_s13 = int_to_ptr.vmem [resolvable:$true] %s17_s13  ;;  %s26_s16 = int_to_ptr.hbm [resolvable:$true] %s25_s16 }
   0x4   :  { %20 = dma.hbm_to_vmem [thread:$0]  %s16_s11, 128, %s18_s13, [#allocation3]  }
   0x5   :  { %s179_s17 = smov [#allocation5]   ;;  %s180_s19 = smov 128  }
   0x6   :  { %s27_s18 = sshll.u32 %s179_s17, 4  ;;  %s181_s20 = smov 8   ;;  %s28_s18 = int_to_ptr.vmem [resolvable:$true] %s27_s18 }
   0x7   :  { %33 = dma.hbm_to_vmem [thread:$0]  %s26_s16, 1024, %s28_s18, [#allocation6], %s180_s19, %s180_s19, %s181_s20  }
   0x8   :  { %172 = dma.done.wait [#allocation3], 128  }
   0x9   :  { %173 = vsyncadd [#allocation3], 4294967168 }
   0xa   :  { %174 = dma.done.wait [#allocation6], 1024  }
   0xb   :  { %175 = vsyncadd [#allocation6], 4294966272  ;;  %v50_v0 = vld [vmem:[#allocation5 + $0x38] sm:$0xff]  ;;  %v49_v1 = vld [vmem:[#allocation5 + $0x30] sm:$0xff]  ;;  %vm51_vm0 = vcmask 523264   ;;  %s182_s0 = smov [#allocation7]  }
   0xc   :  { %63 = vmatpush.msra.mxu0 %v50_v0  ;;  %v48_v2 = vld [vmem:[#allocation5 + $0x28] sm:$0xff]  ;;  %v47_v3 = vld [vmem:[#allocation5 + $0x20] sm:$0xff]  ;;  %v46_v4 = vld [vmem:[#allocation5 + $0x18] sm:$0xff]  ;;  %s81_s1 = sshll.u32 %s182_s0, 4  ;;  %s83_s23 = sshll.u32 %s209_s2, 4  ;;  %s82_s1 = int_to_ptr.vmem [resolvable:$true] %s81_s1  ;;  %s84_s23 = int_to_ptr.hbm [resolvable:$true] %s83_s23 }
   0xd   :  { %v45_v5 = vld [vmem:[#allocation5 + $0x10] sm:$0xff]  ;;  %v44_v6 = vld [vmem:[#allocation5 + $0x8] sm:$0xff]  ;;  %v43_v7 = vld [vmem:[#allocation5] sm:$0xff] }
   0xe   :  { %64 = vmatpush.msra.mxu0 %v49_v1  ;;  %v42_v8 = vld [vmem:[#allocation2] sm:$0xff] }
  0x10   :  { %65 = vmatpush.msra.mxu0 %v48_v2 }
  0x12   :  { %66 = vmatpush.msra.mxu0 %v47_v3 }
  0x14   :  { %67 = vmatpush.msra.mxu0 %v46_v4 }
  0x16   :  { %68 = vmatpush.msra.mxu0 %v45_v5 }
  0x18   :  { %69 = vmatpush.msra.mxu0 %v44_v6 }
  0x1a   :  { %70 = vmatpush.msra.mxu0 %v43_v7 }
  0x1b   :  { %94 = vmatmul.msk.f32.vlgmr.msra.gmra.mxu0 %vm51_vm0, %v42_v8 }
  0x98   :  { %v72_v9 = vpop.f32.mrf.mxu0 }
  0x99   :  { %75 = vst [vmem:[#allocation7] sm:$0xff] %v72_v9 }
  0x9a   :  { %86 = dma.vmem_to_hbm [thread:$0]  %s82_s1, 128, %s84_s23, [#allocation4]  }
  0x9b   :  { %176 = dma.done.wait [#allocation4], 128  }
  0x9c   :  { %177 = vsyncadd [#allocation4], 4294967168 }
  0x9d   :  { %91 = vsyncpa [#allocation3], 1 }
  0x9e   :  { %92 = vsyncpa [#allocation6], 1 }
  0x9f   :  { %93 = vsyncpa [#allocation4], 1 }

</bundles_post_ra>
